<compile_context>
chip_gen: v7x
topology: tpu7x:2x2x1
jax: 0.10.0
libtpu: 0.0.40
codegen_flags: <defaults>
</compile_context>

<pallas_src>
import jax
import jax.numpy as jnp
from jax.experimental import pallas as pl
from jax.experimental.pallas import tpu as pltpu


NUM_STATE = 10    # len(env.reset()) for Environment(10, 10)
HIDDEN = 100
OUT = 1

S_PAD = 16        # num_state padded to a multiple of 8 (sublanes)
H_PAD = 128       # hidden padded to the 128-lane vreg width


def critic_kernel(x_ref, w1_ref, b1_ref, w2_ref, b2_ref, out_ref):
    # x_ref : (S_PAD, TB)   -- features on sublanes, batch on lanes (lane-dense)
    # w1_ref: (H_PAD, S_PAD) -- fc1.weight, PyTorch layout, zero padded (resident)
    # b1_ref: (H_PAD, 1)     -- fc1.bias as a column (resident)
    # w2_ref: (H_PAD, 1)     -- state_value.weight as a column (resident)
    # b2_ref: (1, 1) in SMEM -- state_value.bias (scalar path, no vreg load)
    # out_ref: (1, TB)       -- lane-dense value row for this batch tile

    # fc1 on the MXU: (128,16) @ (16,TB) -> (128,TB), f32 accumulate.
    h = jnp.dot(w1_ref[...], x_ref[...], preferred_element_type=jnp.float32)
    # bias + ReLU on the VPU (lane-broadcast of the (H_PAD,1) bias column).
    h = jnp.maximum(h + b1_ref[...], 0.0)
    # state_value (N=1): VPU multiply + XLU sublane reduction instead of a
    # second, <1%-utilized MXU push.  Scalar bias comes from SMEM.
    v = jnp.sum(h * w2_ref[...], axis=0, keepdims=True) + b2_ref[0, 0]  # (1, TB)
    out_ref[...] = v.astype(out_ref.dtype)


def critic_forward(x, w1, b1, w2, b2, *, block_batch=512):
    """Pallas forward for Critic.

    x : (B, NUM_STATE) f32
    w1: (HIDDEN, NUM_STATE), b1: (HIDDEN,)   -- PyTorch fc1.{weight, bias}
    w2: (OUT, HIDDEN),       b2: (OUT,)      -- PyTorch state_value.{weight, bias}
    returns value: (B, 1) f32
    """
    B = x.shape[0]

    # Batch tile: a multiple of 128 lanes, up to `block_batch` rows per step.
    tb = min(block_batch, 128 * pl.cdiv(B, 128))
    b_pad = tb * pl.cdiv(B, tb)
    grid = (b_pad // tb,)

    # Wrapper-side zero padding + transpose (pure layout plumbing, done by XLA).
    xt = jnp.zeros((S_PAD, b_pad), jnp.float32).at[:NUM_STATE, :B].set(
        x.astype(jnp.float32).T)
    w1p = jnp.zeros((H_PAD, S_PAD), jnp.float32).at[:HIDDEN, :NUM_STATE].set(w1)
    b1p = jnp.zeros((H_PAD, 1), jnp.float32).at[:HIDDEN, 0].set(b1)
    w2p = jnp.zeros((H_PAD, 1), jnp.float32).at[:HIDDEN, 0].set(w2.reshape(-1))
    b2p = jnp.asarray(b2, jnp.float32).reshape(1, 1)

    out = pl.pallas_call(
        critic_kernel,
        out_shape=jax.ShapeDtypeStruct((1, b_pad), jnp.float32),
        grid=grid,
        in_specs=[
            pl.BlockSpec((S_PAD, tb), lambda i: (0, i)),        # batch tile of x
            pl.BlockSpec((H_PAD, S_PAD), lambda i: (0, 0)),     # w1 resident
            pl.BlockSpec((H_PAD, 1), lambda i: (0, 0)),         # b1 resident
            pl.BlockSpec((H_PAD, 1), lambda i: (0, 0)),         # w2 resident
            pl.BlockSpec(memory_space=pltpu.MemorySpace.SMEM),  # b2 scalar
        ],
        out_specs=pl.BlockSpec((1, tb), lambda i: (0, i)),      # lane-dense values
        compiler_params=pltpu.CompilerParams(
            dimension_semantics=("parallel",)),                 # megacore on v7x
    )(xt, w1p, b1p, w2p, b2p)

    # Slice off batch padding and return the module's (B, 1) shape.
    return out[0, :B].reshape(B, 1)


def init_params(key):
    """Deterministic init mimicking torch.nn.Linear default:
    U(-1/sqrt(fan_in), 1/sqrt(fan_in)); weights kept in PyTorch layout."""
    k1, k2, k3, k4 = jax.random.split(key, 4)
    bound1 = NUM_STATE ** -0.5
    bound2 = HIDDEN ** -0.5
    w1 = jax.random.uniform(k1, (HIDDEN, NUM_STATE), jnp.float32, -bound1, bound1)
    b1 = jax.random.uniform(k2, (HIDDEN,), jnp.float32, -bound1, bound1)
    w2 = jax.random.uniform(k3, (OUT, HIDDEN), jnp.float32, -bound2, bound2)
    b2 = jax.random.uniform(k4, (OUT,), jnp.float32, -bound2, bound2)
    return w1, b1, w2, b2


def reference_forward(x, w1, b1, w2, b2):
    hi = jax.lax.Precision.HIGHEST
    h = jnp.maximum(jnp.dot(x, w1.T, precision=hi) + b1, 0.0)
    return jnp.dot(h, w2.T, precision=hi) + b2


if __name__ == "__main__":
    key = jax.random.PRNGKey(0)
    kx, kp = jax.random.split(key)
    w1, b1, w2, b2 = init_params(kp)

    # Small case (single grid step).
    x_small = jax.random.normal(kx, (8, NUM_STATE), dtype=jnp.float32)
    v_small = jax.block_until_ready(critic_forward(x_small, w1, b1, w2, b2))
    ref_small = reference_forward(x_small, w1, b1, w2, b2)
    assert v_small.shape == (8, 1), v_small.shape
    assert jnp.allclose(v_small, ref_small, atol=1e-4, rtol=1e-4), "mismatch (B=8)"

    # Multi-tile case: exercises the batch grid (grid=(3,)), resident weights,
    # and the padding slice-off.
    x_big = jax.random.normal(kx, (300, NUM_STATE), dtype=jnp.float32)
    v_big = jax.block_until_ready(
        critic_forward(x_big, w1, b1, w2, b2, block_batch=128))
    ref_big = reference_forward(x_big, w1, b1, w2, b2)
    assert v_big.shape == (300, 1), v_big.shape
    assert jnp.allclose(v_big, ref_big, atol=1e-4, rtol=1e-4), "mismatch (B=300)"

    print("KERNEL_OK")
</pallas_src>

<mosaic_0001>
module attributes {stable_mosaic.version = 11 : i64} {
  func.func @critic_kernel(%arg0: i32, %arg1: memref<16x128xf32, #tpu.memory_space<vmem>>, %arg2: memref<128x16xf32, #tpu.memory_space<vmem>>, %arg3: memref<128x1xf32, #tpu.memory_space<vmem>>, %arg4: memref<128x1xf32, #tpu.memory_space<vmem>>, %arg5: memref<1x1xf32, #tpu.memory_space<smem>>, %arg6: memref<1x128xf32, #tpu.memory_space<vmem>>) attributes {dimension_semantics = [#tpu.dimension_semantics<parallel>], iteration_bounds = array<i64: 1>, scalar_prefetch = 0 : i64, scratch_operands = 0 : i64, tpu.core_type = #tpu.core_type<tc>, window_params = [{transform_indices = @transform_0, window_bounds = array<i64: 16, 128>}, {pipeline_mode = #tpu.pipeline_mode<synchronous>, transform_indices = @transform_1, window_bounds = array<i64: 128, 16>}, {pipeline_mode = #tpu.pipeline_mode<synchronous>, transform_indices = @transform_2, window_bounds = array<i64: 128, 1>}, {pipeline_mode = #tpu.pipeline_mode<synchronous>, transform_indices = @transform_3, window_bounds = array<i64: 128, 1>}, {transform_indices = @transform_4, window_bounds = array<i64: 1, 1>}, {transform_indices = @transform_5, window_bounds = array<i64: 1, 128>}]} {
    %c0 = arith.constant 0 : index
    %c0_0 = arith.constant 0 : index
    %0 = vector.load %arg2[%c0, %c0_0] : memref<128x16xf32, #tpu.memory_space<vmem>>, vector<128x16xf32>
    %c0_1 = arith.constant 0 : index
    %c0_2 = arith.constant 0 : index
    %1 = vector.load %arg1[%c0_1, %c0_2] : memref<16x128xf32, #tpu.memory_space<vmem>>, vector<16x128xf32>
    %cst = arith.constant dense<0.000000e+00> : vector<128x128xf32>
    %2 = tpu.matmul %0, %1, %cst {dimension_numbers = #tpu.dot_dimension_numbers<[1], [0], [0], [1], [0, 0, 1, 1], [], []>} : vector<128x16xf32>, vector<16x128xf32>, vector<128x128xf32> -> vector<128x128xf32>
    %c0_3 = arith.constant 0 : index
    %c0_4 = arith.constant 0 : index
    %3 = vector.load %arg3[%c0_3, %c0_4] : memref<128x1xf32, #tpu.memory_space<vmem>>, vector<128x1xf32>
    %4 = vector.broadcast %3 : vector<128x1xf32> to vector<128x128xf32>
    %5 = arith.addf %2, %4 : vector<128x128xf32>
    %cst_5 = arith.constant 0.000000e+00 : f32
    %6 = vector.broadcast %cst_5 : f32 to vector<128x128xf32>
    %7 = arith.maximumf %5, %6 : vector<128x128xf32>
    %c0_6 = arith.constant 0 : index
    %c0_7 = arith.constant 0 : index
    %8 = vector.load %arg4[%c0_6, %c0_7] : memref<128x1xf32, #tpu.memory_space<vmem>>, vector<128x1xf32>
    %9 = vector.broadcast %8 : vector<128x1xf32> to vector<128x128xf32>
    %10 = arith.mulf %7, %9 : vector<128x128xf32>
    %cst_8 = arith.constant dense<0.000000e+00> : vector<128xf32>
    %11 = vector.multi_reduction <add>, %10, %cst_8 [0] : vector<128x128xf32> to vector<128xf32>
    %12 = vector.shape_cast %11 : vector<128xf32> to vector<1x128xf32>
    %c0_9 = arith.constant 0 : index
    %c0_10 = arith.constant 0 : index
    %13 = memref.load %arg5[%c0_9, %c0_10] : memref<1x1xf32, #tpu.memory_space<smem>>
    %14 = vector.broadcast %13 : f32 to vector<1x128xf32>
    %15 = arith.addf %12, %14 : vector<1x128xf32>
    %c0_11 = arith.constant 0 : index
    %c0_12 = arith.constant 0 : index
    %16 = vector.load %arg6[%c0_11, %c0_12] : memref<1x128xf32, #tpu.memory_space<vmem>>, vector<1x128xf32>
    tpu.vector_store %arg6[%c0_11, %c0_12], %15 {strides = array<i32>} : memref<1x128xf32, #tpu.memory_space<vmem>>, vector<1x128xf32>,
    return
  }
  func.func @transform_0(%arg0: i32) -> (i32, i32) {
    %c0_i32 = arith.constant 0 : i32
    %c0_i32_0 = arith.constant 0 : i32
    return %c0_i32, %arg0 : i32, i32
  }
  func.func @transform_1(%arg0: i32) -> (i32, i32) {
    %c0_i32 = arith.constant 0 : i32
    %c0_i32_0 = arith.constant 0 : i32
    %c0_i32_1 = arith.constant 0 : i32
    return %c0_i32, %c0_i32_0 : i32, i32
  }
  func.func @transform_2(%arg0: i32) -> (i32, i32) {
    %c0_i32 = arith.constant 0 : i32
    %c0_i32_0 = arith.constant 0 : i32
    %c0_i32_1 = arith.constant 0 : i32
    return %c0_i32, %c0_i32_0 : i32, i32
  }
  func.func @transform_3(%arg0: i32) -> (i32, i32) {
    %c0_i32 = arith.constant 0 : i32
    %c0_i32_0 = arith.constant 0 : i32
    %c0_i32_1 = arith.constant 0 : i32
    return %c0_i32, %c0_i32_0 : i32, i32
  }
  func.func @transform_4(%arg0: i32) -> (i32, i32) {
    %c0_i32 = arith.constant 0 : i32
    %c0_i32_0 = arith.constant 0 : i32
    %c0_i32_1 = arith.constant 0 : i32
    return %c0_i32, %c0_i32_0 : i32, i32
  }
  func.func @transform_5(%arg0: i32) -> (i32, i32) {
    %c0_i32 = arith.constant 0 : i32
    %c0_i32_0 = arith.constant 0 : i32
    return %c0_i32, %arg0 : i32, i32
  }
}

</mosaic_0001>

<bundles_post_ra>
// kernel: tpu_custom_call.1
= control target key start
LH: loop header
LB: loop body
LE: loop exit
PB: predicated region body
PF: predicated region fallthrough
CT: control target
= control target key end

     0   :  { %v593_v3 = vmov 0   ;;  %vm136_vm0 = vcmask 130048   ;;  %s806_s0 = inlined_call_operand.vmem [shape: f32[16,128], index: 0, kind: input, shape index: {}]   ;;  %s807_s1 = inlined_call_operand.vmem [shape: f32[128,16], index: 1, kind: input, shape index: {}]   ;;  %s808_s2 = inlined_call_operand.vmem [shape: f32[128,1], index: 2, kind: input, shape index: {}]   ;;  %s809_s3 = inlined_call_operand.vmem [shape: f32[128,1], index: 3, kind: input, shape index: {}]   ;;  %s810_s4 = inlined_call_operand.<no memory space> [shape: f32[1,1], index: 4, kind: input, shape index: {}]   ;;  %s811_s5 = inlined_call_operand.hbm [shape: f32[1,128], index: 5, kind: output, shape index: {}]  }
   0x1   :  { %v38_v0 = vld [vmem:[%s806_s0] sm:$0xff]  ;;  %v39_v1 = vld [vmem:[%s806_s0 + $0x8] sm:$0xff]  ;;  %567 = vset.pattern.permute.xlu0 %v593_v3  ;;  %568 = vset.pattern.permute.xlu1 %v593_v3  ;;  %v42_v5 = vld [vmem:[%s808_s2 + $0x10] sm:$0xff] }
   0x2   :  { %v40_v2 = vld [vmem:[%s808_s2] sm:$0xff]  ;;  %v559_v4 = vpack.c.bf16 %v39_v1, %v38_v0  ;;  %68 = vperm.xlu1 %568, %v42_v5   ;;  %v41_v8 = vld [vmem:[%s808_s2 + $0x8] sm:$0xff]  ;;  %v43_v9 = vld [vmem:[%s808_s2 + $0x18] sm:$0xff] }
   0x3   :  { %58 = vperm.xlu0 %567, %v40_v2   ;;  %v22_v6 = vld [vmem:[%s807_s1] sm:$0xff]  ;;  %v23_v10 = vld [vmem:[%s807_s1 + $0x8] sm:$0xff]  ;;  %v24_v12 = vld [vmem:[%s807_s1 + $0x10] sm:$0xff] }
   0x4   :  { %v30_v7 = vld [vmem:[%s807_s1 + $0x40] sm:$0xff]  ;;  %560 = vmatprep.subr.bf16.mxu0 %v559_v4  ;;  %563 = vmatprep.subr.bf16.mxu1 %v559_v4  ;;  %v31_v11 = vld [vmem:[%s807_s1 + $0x48] sm:$0xff]  ;;  %v32_v13 = vld [vmem:[%s807_s1 + $0x50] sm:$0xff] }
   0x5   :  { %562 = vmatpush3.bf16.msra.mxu0 %v559_v4  ;;  %564 = vmatpush3.bf16.msra.mxu1 %v559_v4  ;;  %v346_v14 = vld [vmem:[%s809_s3] sm:$0xff]  ;;  %v347_v15 = vld [vmem:[%s809_s3 + $0x8] sm:$0xff]  ;;  %v25_v16 = vld [vmem:[%s807_s1 + $0x18] sm:$0xff] }
   0x6   :  { %535 = vmatprep.mubr.msk.f32.mxu0 %vm136_vm0, %v22_v6  ;;  %547 = vmatprep.mubr.msk.f32.mxu1 %vm136_vm0, %v30_v7  ;;  %v33_v17 = vld [vmem:[%s807_s1 + $0x58] sm:$0xff]  ;;  %v26_v18 = vld [vmem:[%s807_s1 + $0x20] sm:$0xff]  ;;  %v348_v21 = vld [vmem:[%s809_s3 + $0x10] sm:$0xff] }
   0x7   :  { %63 = vperm.xlu0 %567, %v41_v8   ;;  %73 = vperm.xlu1 %568, %v43_v9   ;;  %v34_v19 = vld [vmem:[%s807_s1 + $0x60] sm:$0xff]  ;;  %v27_v22 = vld [vmem:[%s807_s1 + $0x28] sm:$0xff]  ;;  %v28_v24 = vld [vmem:[%s807_s1 + $0x30] sm:$0xff] }
   0x8   :  { %536 = vmatmul.mubr.msk.f32.vlgmr.msra.gmra.mrb[0].mxu0 %vm136_vm0, %v23_v10  ;;  %548 = vmatmul.mubr.msk.f32.vlgmr.msra.gmra.mrb[0].mxu1 %vm136_vm0, %v31_v11  ;;  %v44_v20 = vld [vmem:[%s808_s2 + $0x20] sm:$0xff]  ;;  %v35_v23 = vld [vmem:[%s807_s1 + $0x68] sm:$0xff]  ;;  %v36_v25 = vld [vmem:[%s807_s1 + $0x70] sm:$0xff] }
   0x9   :  { %538 = vmatprep.mubr.msk.f32.mxu0 %vm136_vm0, %v24_v12  ;;  %550 = vmatprep.mubr.msk.f32.mxu1 %vm136_vm0, %v32_v13  ;;  %v45_v26 = vld [vmem:[%s808_s2 + $0x28] sm:$0xff]  ;;  %v349_v27 = vld [vmem:[%s809_s3 + $0x18] sm:$0xff] }
   0xa   :  { %v29_v28 = vld [vmem:[%s807_s1 + $0x38] sm:$0xff] }
   0xb   :  { %364 = vperm.xlu0 %567, %v346_v14   ;;  %369 = vperm.xlu1 %568, %v347_v15   ;;  %v37_v29 = vld [vmem:[%s807_s1 + $0x78] sm:$0xff] }
   0xc   :  { %539 = vmatmul.mubr.msk.f32.gmra.mrb[2].mxu0 %vm136_vm0, %v25_v16  ;;  %551 = vmatmul.mubr.msk.f32.gmra.mrb[2].mxu1 %vm136_vm0, %v33_v17 }
   0xd   :  { %541 = vmatprep.mubr.msk.f32.mxu0 %vm136_vm0, %v26_v18  ;;  %553 = vmatprep.mubr.msk.f32.mxu1 %vm136_vm0, %v34_v19 }
   0xf   :  { %78 = vperm.xlu0 %567, %v44_v20   ;;  %374 = vperm.xlu1 %568, %v348_v21  }
  0x10   :  { %542 = vmatmul.mubr.msk.f32.gmra.mrb[4].mxu0 %vm136_vm0, %v27_v22  ;;  %554 = vmatmul.mubr.msk.f32.gmra.mrb[4].mxu1 %vm136_vm0, %v35_v23 }
  0x11   :  { %544 = vmatprep.mubr.msk.f32.mxu0 %vm136_vm0, %v28_v24  ;;  %556 = vmatprep.mubr.msk.f32.mxu1 %vm136_vm0, %v36_v25 }
  0x12   :  { %11 = vsyncpa [#allocation4], 0  ;;  %v46_v30 = vld [vmem:[%s808_s2 + $0x30] sm:$0xff]  ;;  %v350_v31 = vld [vmem:[%s809_s3 + $0x20] sm:$0xff]  ;;  %s594_s12 = smov [#allocation3]  }
  0x13   :  { %83 = vperm.xlu0 %567, %v45_v26   ;;  %379 = vperm.xlu1 %568, %v349_v27   ;;  %v47_v32 = vld [vmem:[%s808_s2 + $0x38] sm:$0xff]  ;;  %v351_v33 = vld [vmem:[%s809_s3 + $0x28] sm:$0xff]  ;;  %v48_v34 = vld [vmem:[%s808_s2 + $0x40] sm:$0xff]  ;;  %s489_s13 = sshll.u32 %s594_s12, 4  ;;  %s490_s13 = int_to_ptr.vmem [resolvable:$true] %s489_s13 }
  0x14   :  { %545 = vmatmul.mubr.msk.f32.gmra.mrb[6].mxu0 %vm136_vm0, %v29_v28  ;;  %557 = vmatmul.mubr.msk.f32.gmra.mrb[6].mxu1 %vm136_vm0, %v37_v29  ;;  %v352_v35 = vld [vmem:[%s809_s3 + $0x30] sm:$0xff]  ;;  %v49_v36 = vld [vmem:[%s808_s2 + $0x48] sm:$0xff]  ;;  %v353_v37 = vld [vmem:[%s809_s3 + $0x38] sm:$0xff]  ;;  %s569_s14 = scalar_lea.vmem %s490_s13, 16  ;;  %s573_s15 = scalar_lea.vmem %s490_s13, 32 }
  0x15   :  { %v50_v38 = vld [vmem:[%s808_s2 + $0x50] sm:$0xff]  ;;  %v354_v39 = vld [vmem:[%s809_s3 + $0x40] sm:$0xff]  ;;  %v51_v40 = vld [vmem:[%s808_s2 + $0x58] sm:$0xff]  ;;  %p570_p0 = scmp.ne.s32.totalorder %s490_s13, %s569_s14  ;;  %p574_p1 = scmp.lt.s32.totalorder %s490_s13, %s490_s13 }
  0x16   :  { %v355_v41 = vld [vmem:[%s809_s3 + $0x48] sm:$0xff]  ;;  %v52_v42 = vld [vmem:[%s808_s2 + $0x60] sm:$0xff]  ;;  %v356_v43 = vld [vmem:[%s809_s3 + $0x50] sm:$0xff]  ;;  %p575_p2 = scmp.lt.s32.totalorder %s573_s15, %s569_s14 }
  0x17   :  { %88 = vperm.xlu0 %567, %v46_v30   ;;  %384 = vperm.xlu1 %568, %v350_v31   ;;  %v53_v44 = vld [vmem:[%s808_s2 + $0x68] sm:$0xff]  ;;  %v357_v45 = vld [vmem:[%s809_s3 + $0x58] sm:$0xff]  ;;  %v54_v46 = vld [vmem:[%s808_s2 + $0x70] sm:$0xff] }
  0x18   :  { %v358_v47 = vld [vmem:[%s809_s3 + $0x60] sm:$0xff]  ;;  %v55_v48 = vld [vmem:[%s808_s2 + $0x78] sm:$0xff]  ;;  %v359_v49 = vld [vmem:[%s809_s3 + $0x68] sm:$0xff]  ;;  %p576_p3 = por %p575_p2, %p574_p1 }
  0x19   :  { %v360_v50 = vld [vmem:[%s809_s3 + $0x70] sm:$0xff]  ;;  %v361_v51 = vld [vmem:[%s809_s3 + $0x78] sm:$0xff] }
  0x1a   :  { %p577_p4 = pnand %p576_p3, %p570_p0 }
  0x1b   :  { %93 = vperm.xlu0 %567, %v47_v32   ;;  %389 = vperm.xlu1 %568, %v351_v33  }
  0x1f   :  { %98 = vperm.xlu0 %567, %v48_v34   ;;  %394 = vperm.xlu1 %568, %v352_v35  }
  0x23   :  { %103 = vperm.xlu0 %567, %v49_v36   ;;  %399 = vperm.xlu1 %568, %v353_v37  }
  0x27   :  { %108 = vperm.xlu0 %567, %v50_v38   ;;  %404 = vperm.xlu1 %568, %v354_v39  }
  0x2b   :  { %113 = vperm.xlu0 %567, %v51_v40   ;;  %409 = vperm.xlu1 %568, %v355_v41  }
  0x2f   :  { %118 = vperm.xlu0 %567, %v52_v42   ;;  %414 = vperm.xlu1 %568, %v356_v43  }
  0x33   :  { %123 = vperm.xlu0 %567, %v53_v44   ;;  %419 = vperm.xlu1 %568, %v357_v45  }
  0x37   :  { %128 = vperm.xlu0 %567, %v54_v46   ;;  %424 = vperm.xlu1 %568, %v358_v47  }
  0x3b   :  { %133 = vperm.xlu0 %567, %v55_v48   ;;  %429 = vperm.xlu1 %568, %v359_v49  }
  0x3f   :  { %434 = vperm.xlu0 %567, %v360_v50   ;;  %439 = vperm.xlu1 %568, %v361_v51  }
  0x81   :  { %v69_v53 = vpop.permute.xlu1 %68 }
  0x82   :  { %v59_v52 = vpop.permute.xlu0 %58 }
  0x86   :  { %v64_v54 = vpop.permute.xlu0 %63  ;;  %v74_v55 = vpop.permute.xlu1 %73 }
  0x8a   :  { %v365_v56 = vpop.permute.xlu0 %364  ;;  %v370_v57 = vpop.permute.xlu1 %369 }
  0x8e   :  { %v79_v58 = vpop.permute.xlu0 %78  ;;  %v375_v59 = vpop.permute.xlu1 %374 }
  0x92   :  { %v84_v60 = vpop.permute.xlu0 %83  ;;  %v380_v61 = vpop.permute.xlu1 %379 }
  0x96   :  { %v89_v62 = vpop.permute.xlu0 %88  ;;  %v385_v63 = vpop.permute.xlu1 %384 }
  0x9a   :  { %v94_v0 = vpop.permute.xlu0 %93  ;;  %v390_v1 = vpop.permute.xlu1 %389 }
  0x9e   :  { %v99_v2 = vpop.permute.xlu0 %98  ;;  %v395_v3 = vpop.permute.xlu1 %394 }
  0xa2   :  { %v104_v4 = vpop.permute.xlu0 %103  ;;  %v400_v5 = vpop.permute.xlu1 %399 }
  0xa6   :  { %v109_v6 = vpop.permute.xlu0 %108  ;;  %v405_v7 = vpop.permute.xlu1 %404 }
  0xaa   :  { %v114_v8 = vpop.permute.xlu0 %113  ;;  %v410_v15 = vpop.permute.xlu1 %409 }
  0xae   :  { %v119_v26 = vpop.permute.xlu0 %118  ;;  %v415_v37 = vpop.permute.xlu1 %414 }
  0xb2   :  { %v124_v51 = vpop.permute.xlu0 %123 }
  0xdb   :  { %v537_v9 = vpop.f32.mrb[0].mxu0  ;;  %v549_v10 = vpop.f32.mrb[0].mxu1 }
  0xdc   :  { %v257_v11 = vadd.f32 %v537_v9, %v64_v54  ;;  %v251_v12 = vpop.f32.mrb[1].mxu0  ;;  %v291_v13 = vpop.f32.mrb[1].mxu1 }
  0xdd   :  { %v252_v14 = vadd.f32 %v251_v12, %v59_v52  ;;  %v292_v47 = vadd.f32 %v291_v13, %v99_v2  ;;  %v297_v52 = vadd.f32 %v549_v10, %v104_v4 }
  0xde   :  { %v331_v16 = vmax.f32 %v257_v11, 0.0 }
  0xdf   :  { %v330_v17 = vmax.f32 %v252_v14, 0.0  ;;  %v540_v18 = vpop.f32.mrb[2].mxu0  ;;  %v552_v19 = vpop.f32.mrb[2].mxu1  ;;  %v339_v9 = vmax.f32 %v297_v52, 0.0 }
  0xe0   :  { %v443_v20 = vmul.f32 %v370_v57, %v331_v16  ;;  %v267_v21 = vadd.f32 %v540_v18, %v74_v55  ;;  %v261_v22 = vpop.f32.mrb[3].mxu0  ;;  %v301_v23 = vpop.f32.mrb[3].mxu1  ;;  %v307_v11 = vadd.f32 %v552_v19, %v114_v8 }
  0xe1   :  { %v442_v24 = vmul.f32 %v365_v56, %v330_v17  ;;  %v262_v25 = vadd.f32 %v261_v22, %v69_v53  ;;  %v420_v57 = vpop.permute.xlu1 %419  ;;  %v129_v14 = vpop.permute.xlu0 %128  ;;  %v451_v4 = vmul.f32 %v410_v15, %v339_v9 }
  0xe2   :  { %v333_v28 = vmax.f32 %v267_v21, 0.0 }
  0xe3   :  { %v458_v27 = vadd.f32 %v443_v20, %v442_v24  ;;  %v332_v29 = vmax.f32 %v262_v25, 0.0  ;;  %v543_v30 = vpop.f32.mrb[4].mxu0  ;;  %v555_v31 = vpop.f32.mrb[4].mxu1 }
  0xe4   :  { %v277_v32 = vadd.f32 %v543_v30, %v84_v60  ;;  %v271_v33 = vpop.f32.mrb[5].mxu0  ;;  %v311_v34 = vpop.f32.mrb[5].mxu1  ;;  %v445_v38 = vmul.f32 %v380_v61, %v333_v28  ;;  %v317_v10 = vadd.f32 %v555_v31, %v124_v51 }
  0xe5   :  { %v444_v35 = vmul.f32 %v375_v59, %v332_v29  ;;  %v272_v36 = vadd.f32 %v271_v33, %v79_v58  ;;  %v338_v58 = vmax.f32 %v292_v47, 0.0  ;;  %v302_v59 = vadd.f32 %v301_v23, %v109_v6  ;;  %v425_v16 = vpop.permute.xlu1 %424 }
  0xe6   :  { %v335_v40 = vmax.f32 %v277_v32, 0.0  ;;  %v312_v13 = vadd.f32 %v311_v34, %v119_v26  ;;  %v343_v23 = vmax.f32 %v317_v10, 0.0 }
  0xe7   :  { %v459_v39 = vadd.f32 %v458_v27, %v444_v35  ;;  %v334_v41 = vmax.f32 %v272_v36, 0.0  ;;  %v546_v42 = vpop.f32.mrb[6].mxu0  ;;  %v558_v43 = vpop.f32.mrb[6].mxu1  ;;  %v450_v2 = vmul.f32 %v405_v7, %v338_v58 }
  0xe8   :  { %v287_v44 = vadd.f32 %v546_v42, %v94_v0  ;;  %v281_v45 = vpop.f32.mrb[7].mxu0  ;;  %v321_v46 = vpop.f32.mrb[7].mxu1  ;;  %v447_v53 = vmul.f32 %v390_v1, %v335_v40  ;;  %v341_v1 = vmax.f32 %v307_v11, 0.0  ;;  %v342_v20 = vmax.f32 %v312_v13, 0.0 }
  0xe9   :  { %v446_v48 = vmul.f32 %v385_v63, %v334_v41  ;;  %v460_v49 = vadd.f32 %v459_v39, %v445_v38  ;;  %v282_v50 = vadd.f32 %v281_v45, %v89_v62  ;;  %v340_v63 = vmax.f32 %v302_v59, 0.0  ;;  %v430_v19 = vpop.permute.xlu1 %429 }
  0xea   :  { %v337_v55 = vmax.f32 %v287_v44, 0.0  ;;  %v322_v6 = vadd.f32 %v321_v46, %v129_v14  ;;  %v453_v22 = vmul.f32 %v420_v57, %v341_v1  ;;  %v454_v24 = vmul.f32 %v425_v16, %v342_v20 }
  0xeb   :  { %v461_v54 = vadd.f32 %v460_v49, %v446_v48  ;;  %v336_v56 = vmax.f32 %v282_v50, 0.0  ;;  %v452_v18 = vmul.f32 %v415_v37, %v340_v63  ;;  %v455_v26 = vmul.f32 %v430_v19, %v343_v23 }
  0xec   :  { %v449_v0 = vmul.f32 %v400_v5, %v337_v55  ;;  %v344_v7 = vmax.f32 %v322_v6, 0.0  ;;  %v480_v40 = vstv %s810_s4 }
  0xed   :  { %v448_v60 = vmul.f32 %v395_v3, %v336_v56  ;;  %v462_v61 = vadd.f32 %v461_v54, %v447_v53  ;;  %v134_v3 = vpop.permute.xlu0 %133  ;;  %v440_v31 = vpop.permute.xlu1 %439 }
  0xee   :  { %v327_v8 = vadd.f32 %v558_v43, %v134_v3 }
  0xef   :  { %v463_v12 = vadd.f32 %v462_v61, %v448_v60 }
  0xf0   :  { %v345_v27 = vmax.f32 %v327_v8, 0.0 }
  0xf1   :  { %v464_v62 = vadd.f32 %v463_v12, %v449_v0  ;;  %v435_v15 = vpop.permute.xlu0 %434 }
  0xf2   :  { %v456_v29 = vmul.f32 %v435_v15, %v344_v7  ;;  %v457_v32 = vmul.f32 %v440_v31, %v345_v27 }
  0xf3   :  { %v465_v17 = vadd.f32 %v464_v62, %v450_v2 }
  0xf5   :  { %v466_v21 = vadd.f32 %v465_v17, %v451_v4 }
  0xf7   :  { %v467_v5 = vadd.f32 %v466_v21, %v452_v18 }
  0xf9   :  { %v468_v25 = vadd.f32 %v467_v5, %v453_v22 }
  0xfb   :  { %v469_v28 = vadd.f32 %v468_v25, %v454_v24 }
  0xfd   :  { %v470_v30 = vadd.f32 %v469_v28, %v455_v26 }
  0xff   :  { %v471_v33 = vadd.f32 %v470_v30, %v456_v29 }
 0x101   :  { %v472_v34 = vadd.f32 %v471_v33, %v457_v32 }
 0x103   :  { %v473_v35 = vrot.slane %v472_v34, 4 }
 0x105   :  { %v474_v36 = vadd.f32 %v473_v35, %v472_v34 }
 0x107   :  { %v475_v37 = vrot.slane %v474_v36, 2 }
 0x109   :  { %v476_v38 = vadd.f32 %v475_v37, %v474_v36 }
 0x10b   :  { %v477_v39 = vrot.slane %v476_v38, 1 }
 0x10d   :  { %v478_v41 = vadd.f32 %v477_v39, %v476_v38 }
 0x10f   :  { %v481_v42 = vadd.f32 %v480_v40, %v478_v41 }
 0x111   :  { %482 = vst [vmem:[#allocation3] sm:$0x1] %v481_v42 }
 0x112   :  { %580 = shalt.err (!%p577_p4)
}
 0x113   :  { %s581_s18 = scalar_lea.hbm %s811_s5, 16 }
 0x114   :  { %p582_p5 = scmp.ne.s32.totalorder %s811_s5, %s581_s18  ;;  %p585_p6 = scmp.lt.u32.totalorder %s581_s18, %s811_s5 }
 0x116   :  { %p587_p7 = pnand %p585_p6, %p582_p5 }
 0x118   :  { %590 = shalt.err (!%p587_p7)
}
 0x119   :  { %492 = dma.vmem_to_hbm [thread:$0]  %s490_s13, 16, %s811_s5, [#allocation4]  }
 0x11a   :  { %591 = dma.done.wait [#allocation4], 16  }
 0x11b   :  { %592 = vsyncadd [#allocation4], 4294967280 }
 0x11c   :  { %496 = vsyncpa [#allocation4], 1 }

</bundles_post_ra>
